<compile_context>
chip_gen: v7x
topology: tpu7x:2x2x1
jax: 0.10.0
libtpu: 0.0.40
codegen_flags: <defaults>
</compile_context>

<pallas_src>
import jax
import jax.numpy as jnp
from jax.experimental import pallas as pl
from jax.experimental.pallas import tpu as pltpu

NUM_CLASSES = 100
INPUT_DIM = 32 * 32          # 1024 (K), already a multiple of 128
N_PAD = 128                  # lane-aligned padded class dim (keep 128 on all gens)
TM_MAX = 1024                # max batch-row tile; safe on v5e default scoped VMEM


def _round_up(a, m):
    return (a + m - 1) // m * m


def _logreg_kernel(x_ref, w_ref, b_ref, o_ref):
    # x_ref: (TM, K)  w_ref: (K, N_PAD)  b_ref: (1, N_PAD)  o_ref: (TM, N_PAD)
    x = x_ref[...]
    w = w_ref[...]
    if w.dtype != x.dtype:
        # In-kernel cast (VPU, data already in VMEM) so HBM only ever sees the
        # narrow weight when prepare_params(dtype=bf16) is used.
        w = w.astype(x.dtype)
    acc = jnp.dot(x, w, preferred_element_type=jnp.float32)
    o_ref[...] = (acc + b_ref[...]).astype(o_ref.dtype)


def prepare_params(weight, bias, dtype=jnp.float32):
    """Hoisted out of the hot path: do this ONCE per parameter set.

    weight: (num_classes, input_dim)  -- PyTorch nn.Linear layout
    bias:   (num_classes,)
    Returns (w_pad, b_pad): (input_dim, 128) and (1, 128), zero-padded on the
    class dim so the kernel output is lane-dense.  Pass dtype=jnp.bfloat16 to
    halve weight HBM bytes (bias / accumulation stay f32); results then differ
    from the f32 reference by bf16 quantization of W only.
    """
    w_pad = jnp.zeros((INPUT_DIM, N_PAD), dtype)
    w_pad = w_pad.at[:, :NUM_CLASSES].set(weight.T.astype(dtype))
    b_pad = jnp.zeros((1, N_PAD), jnp.float32)
    b_pad = b_pad.at[:, :NUM_CLASSES].set(bias.astype(jnp.float32))
    return w_pad, b_pad


def _choose_tm(b):
    """Row-tile selection.

    - Tiny batches: one 8-aligned block.
    - Moderate batches: split so the grid has >= 2 steps (v7x has 2 TCs and
      "parallel" only helps with >= 2 iterations); no-op cost on v5e/v6e.
    - Large batches: cap at TM_MAX to bound VMEM.
    """
    if b <= 16:
        return max(8, _round_up(b, 8))
    tm = _round_up(pl.cdiv(b, 2), 8)
    return min(TM_MAX, tm)


def logistic_regression_cif_prepared(x, w_pad, b_pad):
    """Forward pass using pre-prepared (transposed / padded / cast) params.

    x: any shape whose flattened size is a multiple of INPUT_DIM.
    Returns (B, NUM_CLASSES) float32.
    """
    x_flat = x.reshape(-1, INPUT_DIM)          # no astype: keep caller's dtype
    b = x_flat.shape[0]

    tm = _choose_tm(b)
    grid = (pl.cdiv(b, tm),)                   # partial last block handled by Pallas

    x_bytes = jnp.dtype(x_flat.dtype).itemsize
    w_bytes = jnp.dtype(w_pad.dtype).itemsize

    out = pl.pallas_call(
        _logreg_kernel,
        out_shape=jax.ShapeDtypeStruct((b, N_PAD), jnp.float32),
        grid_spec=pltpu.PrefetchScalarGridSpec(
            num_scalar_prefetch=0,
            grid=grid,
            in_specs=[
                # x: tiled over the batch grid axis
                pl.BlockSpec((tm, INPUT_DIM), lambda i: (i, 0)),
                # W, bias: same block every step -> stay resident in VMEM
                pl.BlockSpec((INPUT_DIM, N_PAD), lambda i: (0, 0)),
                pl.BlockSpec((1, N_PAD), lambda i: (0, 0)),
            ],
            out_specs=pl.BlockSpec((tm, N_PAD), lambda i: (i, 0)),
        ),
        compiler_params=pltpu.CompilerParams(
            dimension_semantics=("parallel",),
        ),
        cost_estimate=pl.CostEstimate(
            flops=2 * b * INPUT_DIM * N_PAD,
            transcendentals=0,
            bytes_accessed=b * INPUT_DIM * x_bytes
            + INPUT_DIM * N_PAD * w_bytes
            + (N_PAD + b * N_PAD) * 4,
        ),
    )(x_flat, w_pad, b_pad)

    # Run under jax.jit with the consumer so this slice fuses (no extra copy).
    return out[:, :NUM_CLASSES]


def logistic_regression_cif(x, weight, bias):
    """Convenience one-shot API (prepares params per call).

    For repeated calls with fixed parameters, call prepare_params() once and
    use logistic_regression_cif_prepared() to avoid re-transposing the weight.
    """
    w_pad, b_pad = prepare_params(weight, bias)
    return logistic_regression_cif_prepared(x, w_pad, b_pad)


if __name__ == "__main__":
    key = jax.random.PRNGKey(0)
    kx, kw, kb = jax.random.split(key, 3)

    # Deterministic example (shapes follow nn.Linear(input_dim, num_classes)).
    batch = 8
    x = jax.random.normal(kx, (batch, 1, 32, 32), dtype=jnp.float32)  # -> (8, 1024)
    bound = 1.0 / (INPUT_DIM ** 0.5)
    weight = jax.random.uniform(kw, (NUM_CLASSES, INPUT_DIM),
                                minval=-bound, maxval=bound, dtype=jnp.float32)
    bias = jax.random.uniform(kb, (NUM_CLASSES,),
                              minval=-bound, maxval=bound, dtype=jnp.float32)

    # Hoist parameter prep out of the hot path (done once).
    # Pass dtype=jnp.bfloat16 here to halve weight HBM bytes on inference.
    w_pad, b_pad = prepare_params(weight, bias)

    fwd = jax.jit(logistic_regression_cif_prepared)   # fuses the [:, :100] slice
    out = fwd(x, w_pad, b_pad)
    out = jax.block_until_ready(out)

    # Reference check in plain JAX.
    ref = x.reshape(-1, INPUT_DIM) @ weight.T + bias
    assert out.shape == (batch, NUM_CLASSES)
    assert jnp.allclose(out, ref, atol=1e-4, rtol=1e-4)
    print("KERNEL_OK")
</pallas_src>

<mosaic_0001>
module attributes {stable_mosaic.version = 11 : i64} {
  func.func @_logreg_kernel(%arg0: i32, %arg1: memref<8x1024xf32, #tpu.memory_space<vmem>>, %arg2: memref<1024x128xf32, #tpu.memory_space<vmem>>, %arg3: memref<1x128xf32, #tpu.memory_space<vmem>>, %arg4: memref<8x128xf32, #tpu.memory_space<vmem>>) attributes {dimension_semantics = [#tpu.dimension_semantics<parallel>], iteration_bounds = array<i64: 1>, scalar_prefetch = 0 : i64, scratch_operands = 0 : i64, tpu.core_type = #tpu.core_type<tc>, window_params = [{transform_indices = @transform_0, window_bounds = array<i64: 8, 1024>}, {pipeline_mode = #tpu.pipeline_mode<synchronous>, transform_indices = @transform_1, window_bounds = array<i64: 1024, 128>}, {pipeline_mode = #tpu.pipeline_mode<synchronous>, transform_indices = @transform_2, window_bounds = array<i64: 1, 128>}, {transform_indices = @transform_3, window_bounds = array<i64: 8, 128>}]} {
    %c0 = arith.constant 0 : index
    %c0_0 = arith.constant 0 : index
    %0 = vector.load %arg1[%c0, %c0_0] : memref<8x1024xf32, #tpu.memory_space<vmem>>, vector<8x1024xf32>
    %c0_1 = arith.constant 0 : index
    %c0_2 = arith.constant 0 : index
    %1 = vector.load %arg2[%c0_1, %c0_2] : memref<1024x128xf32, #tpu.memory_space<vmem>>, vector<1024x128xf32>
    %cst = arith.constant dense<0.000000e+00> : vector<8x128xf32>
    %2 = tpu.matmul %0, %1, %cst {dimension_numbers = #tpu.dot_dimension_numbers<[1], [0], [0], [1], [0, 0, 1, 1], [], []>} : vector<8x1024xf32>, vector<1024x128xf32>, vector<8x128xf32> -> vector<8x128xf32>
    %c0_3 = arith.constant 0 : index
    %c0_4 = arith.constant 0 : index
    %3 = vector.load %arg3[%c0_3, %c0_4] : memref<1x128xf32, #tpu.memory_space<vmem>>, vector<1x128xf32>
    %4 = vector.broadcast %3 : vector<1x128xf32> to vector<8x128xf32>
    %5 = arith.addf %2, %4 : vector<8x128xf32>
    %c0_5 = arith.constant 0 : index
    %c0_6 = arith.constant 0 : index
    %6 = vector.load %arg4[%c0_5, %c0_6] : memref<8x128xf32, #tpu.memory_space<vmem>>, vector<8x128xf32>
    tpu.vector_store %arg4[%c0_5, %c0_6], %5 {strides = array<i32>} : memref<8x128xf32, #tpu.memory_space<vmem>>, vector<8x128xf32>,
    return
  }
  func.func @transform_0(%arg0: i32) -> (i32, i32) {
    %c0_i32 = arith.constant 0 : i32
    %c0_i32_0 = arith.constant 0 : i32
    return %arg0, %c0_i32 : i32, i32
  }
  func.func @transform_1(%arg0: i32) -> (i32, i32) {
    %c0_i32 = arith.constant 0 : i32
    %c0_i32_0 = arith.constant 0 : i32
    %c0_i32_1 = arith.constant 0 : i32
    return %c0_i32, %c0_i32_0 : i32, i32
  }
  func.func @transform_2(%arg0: i32) -> (i32, i32) {
    %c0_i32 = arith.constant 0 : i32
    %c0_i32_0 = arith.constant 0 : i32
    %c0_i32_1 = arith.constant 0 : i32
    return %c0_i32, %c0_i32_0 : i32, i32
  }
  func.func @transform_3(%arg0: i32) -> (i32, i32) {
    %c0_i32 = arith.constant 0 : i32
    %c0_i32_0 = arith.constant 0 : i32
    return %arg0, %c0_i32 : i32, i32
  }
}

</mosaic_0001>

<bundles_post_ra>
// kernel: logistic_regression_cif_prepared.1
= control target key start
LH: loop header
LB: loop body
LE: loop exit
PB: predicated region body
PF: predicated region fallthrough
CT: control target
= control target key end

     0   :  { %8 = vsyncpa [#allocation3], 0  ;;  %s864_s0 = inlined_call_operand.vmem [shape: f32[8,1024], index: 0, kind: input, shape index: {}]   ;;  %s865_s1 = inlined_call_operand.hbm [shape: f32[1024,128], index: 1, kind: input, shape index: {}]   ;;  %s866_s2 = inlined_call_operand.vmem [shape: f32[1,128], index: 2, kind: input, shape index: {}]   ;;  %s867_s3 = inlined_call_operand.hbm [shape: f32[8,128], index: 3, kind: output, shape index: {}]  }
   0x1   :  { %9 = vsyncpa [#allocation4], 0  ;;  %s789_s12 = smov [#allocation2]   ;;  %s741_s16 = scalar_lea.hbm %s865_s1, 16384 }
   0x2   :  { %s17_s13 = sshll.u32 %s789_s12, 4  ;;  %p742_p0 = scmp.ne.s32.totalorder %s865_s1, %s741_s16  ;;  %s18_s13 = int_to_ptr.vmem [resolvable:$true] %s17_s13 }
   0x3   :  { %p745_p1 = scmp.lt.u32.totalorder %s741_s16, %s865_s1 }
   0x5   :  { %p747_p2 = pnand %p745_p1, %p742_p0 }
   0x7   :  { %750 = shalt.err (!%p747_p2)
}
   0x8   :  { %s751_s21 = scalar_lea.vmem %s18_s13, 16384  ;;  %p756_p4 = scmp.lt.s32.totalorder %s18_s13, %s18_s13 }
   0x9   :  { %p752_p3 = scmp.ne.s32.totalorder %s18_s13, %s751_s21  ;;  %p757_p5 = scmp.lt.s32.totalorder %s751_s21, %s751_s21 }
   0xb   :  { %p758_p6 = por %p757_p5, %p756_p4 }
   0xd   :  { %p759_p7 = pnand %p758_p6, %p752_p3 }
   0xf   :  { %762 = shalt.err (!%p759_p7)
}
  0x10   :  { %s790_s22 = smov 128   ;;  %s791_s23 = smov 8  }
  0x11   :  { %23 = dma.hbm_to_vmem [thread:$0]  %s865_s1, 16384, %s18_s13, [#allocation3], %s790_s22, %s790_s22, %s791_s23  }
  0x12   :  { %785 = dma.done.wait [#allocation3], 16384  }
  0x13   :  { %786 = vsyncadd [#allocation3], 4294950912  ;;  %v53_v0 = vld [vmem:[#allocation2 + $0x80] sm:$0xff]  ;;  %v54_v1 = vld [vmem:[#allocation2 + $0x88] sm:$0xff] }
  0x14   :  { %v37_v2 = vld [vmem:[#allocation2] sm:$0xff]  ;;  %v609_v3 = vpack.c.bf16 %v54_v1, %v53_v0  ;;  %v38_v4 = vld [vmem:[#allocation2 + $0x8] sm:$0xff]  ;;  %v55_v11 = vld [vmem:[#allocation2 + $0x90] sm:$0xff] }
  0x15   :  { %v85_v5 = vld [vmem:[#allocation2 + $0x180] sm:$0xff]  ;;  %v86_v6 = vld [vmem:[#allocation2 + $0x188] sm:$0xff]  ;;  %v611_v7 = vpack.c.bf16 %v38_v4, %v37_v2  ;;  %v56_v13 = vld [vmem:[#allocation2 + $0x98] sm:$0xff] }
  0x16   :  { %v641_v8 = vpack.c.bf16 %v86_v6, %v85_v5  ;;  %v69_v9 = vld [vmem:[#allocation2 + $0x100] sm:$0xff]  ;;  %v70_v10 = vld [vmem:[#allocation2 + $0x108] sm:$0xff]  ;;  %610 = vmatprep.subr.bf16.mxu0 %v609_v3  ;;  %v39_v14 = vld [vmem:[#allocation2 + $0x10] sm:$0xff]  ;;  %v613_v16 = vpack.c.bf16 %v56_v13, %v55_v11 }
  0x17   :  { %v643_v12 = vpack.c.bf16 %v70_v10, %v69_v9  ;;  %v40_v15 = vld [vmem:[#allocation2 + $0x18] sm:$0xff]  ;;  %612 = vmatpush3.bf16.msra.mxu0 %v611_v7  ;;  %v87_v18 = vld [vmem:[#allocation2 + $0x190] sm:$0xff]  ;;  %v57_v23 = vld [vmem:[#allocation2 + $0xa0] sm:$0xff] }
  0x18   :  { %642 = vmatprep.subr.bf16.mxu1 %v641_v8  ;;  %v615_v17 = vpack.c.bf16 %v40_v15, %v39_v14  ;;  %v88_v19 = vld [vmem:[#allocation2 + $0x198] sm:$0xff]  ;;  %v71_v20 = vld [vmem:[#allocation2 + $0x110] sm:$0xff]  ;;  %v58_v24 = vld [vmem:[#allocation2 + $0xa8] sm:$0xff]  ;;  %614 = vmatprep.subr.bf16.mxu0 %v613_v16 }
  0x19   :  { %644 = vmatpush3.bf16.msra.mxu1 %v643_v12  ;;  %v645_v21 = vpack.c.bf16 %v88_v19, %v87_v18  ;;  %v72_v22 = vld [vmem:[#allocation2 + $0x118] sm:$0xff]  ;;  %v617_v26 = vpack.c.bf16 %v58_v24, %v57_v23  ;;  %v41_v27 = vld [vmem:[#allocation2 + $0x20] sm:$0xff]  ;;  %v42_v28 = vld [vmem:[#allocation2 + $0x28] sm:$0xff] }
  0x1a   :  { %v647_v25 = vpack.c.bf16 %v72_v22, %v71_v20  ;;  %v89_v29 = vld [vmem:[#allocation2 + $0x1a0] sm:$0xff]  ;;  %v90_v30 = vld [vmem:[#allocation2 + $0x1a8] sm:$0xff]  ;;  %v619_v33 = vpack.c.bf16 %v42_v28, %v41_v27  ;;  %v59_v35 = vld [vmem:[#allocation2 + $0xb0] sm:$0xff] }
  0x1b   :  { %646 = vmatprep.subr.bf16.mxu1 %v645_v21  ;;  %v73_v31 = vld [vmem:[#allocation2 + $0x120] sm:$0xff]  ;;  %v74_v32 = vld [vmem:[#allocation2 + $0x128] sm:$0xff]  ;;  %616 = vmatpush3.bf16.msra.mxu0 %v615_v17  ;;  %v649_v34 = vpack.c.bf16 %v90_v30, %v89_v29  ;;  %v60_v36 = vld [vmem:[#allocation2 + $0xb8] sm:$0xff] }
  0x1c   :  { %v43_v37 = vld [vmem:[#allocation2 + $0x30] sm:$0xff]  ;;  %618 = vmatprep.subr.bf16.mxu0 %v617_v26  ;;  %v651_v38 = vpack.c.bf16 %v74_v32, %v73_v31  ;;  %v621_v39 = vpack.c.bf16 %v60_v36, %v59_v35  ;;  %v44_v40 = vld [vmem:[#allocation2 + $0x38] sm:$0xff]  ;;  %v61_v46 = vld [vmem:[#allocation2 + $0xc0] sm:$0xff] }
  0x1d   :  { %648 = vmatpush3.bf16.msra.mxu1 %v647_v25  ;;  %v91_v41 = vld [vmem:[#allocation2 + $0x1b0] sm:$0xff]  ;;  %v92_v42 = vld [vmem:[#allocation2 + $0x1b8] sm:$0xff]  ;;  %v62_v47 = vld [vmem:[#allocation2 + $0xc8] sm:$0xff]  ;;  %v623_v48 = vpack.c.bf16 %v44_v40, %v43_v37 }
  0x1e   :  { %650 = vmatprep.subr.bf16.mxu1 %v649_v34  ;;  %v653_v43 = vpack.c.bf16 %v92_v42, %v91_v41  ;;  %v75_v44 = vld [vmem:[#allocation2 + $0x130] sm:$0xff]  ;;  %v76_v45 = vld [vmem:[#allocation2 + $0x138] sm:$0xff]  ;;  %v93_v49 = vld [vmem:[#allocation2 + $0x1c0] sm:$0xff]  ;;  %v625_v52 = vpack.c.bf16 %v62_v47, %v61_v46 }
  0x1f   :  { %620 = vmatpush3.bf16.msra.mxu0 %v619_v33  ;;  %v94_v50 = vld [vmem:[#allocation2 + $0x1c8] sm:$0xff]  ;;  %v655_v51 = vpack.c.bf16 %v76_v45, %v75_v44  ;;  %v45_v53 = vld [vmem:[#allocation2 + $0x40] sm:$0xff]  ;;  %v63_v58 = vld [vmem:[#allocation2 + $0xd0] sm:$0xff] }
  0x20   :  { %622 = vmatprep.subr.bf16.mxu0 %v621_v39  ;;  %v46_v54 = vld [vmem:[#allocation2 + $0x48] sm:$0xff]  ;;  %v77_v55 = vld [vmem:[#allocation2 + $0x140] sm:$0xff]  ;;  %v657_v56 = vpack.c.bf16 %v94_v50, %v93_v49  ;;  %v64_v59 = vld [vmem:[#allocation2 + $0xd8] sm:$0xff] }
  0x21   :  { %652 = vmatpush3.bf16.msra.mxu1 %v651_v38  ;;  %v78_v57 = vld [vmem:[#allocation2 + $0x148] sm:$0xff]  ;;  %v95_v60 = vld [vmem:[#allocation2 + $0x1d0] sm:$0xff]  ;;  %v96_v61 = vld [vmem:[#allocation2 + $0x1d8] sm:$0xff]  ;;  %v627_v62 = vpack.c.bf16 %v46_v54, %v45_v53  ;;  %v629_v0 = vpack.c.bf16 %v64_v59, %v63_v58 }
  0x22   :  { %654 = vmatprep.subr.bf16.mxu1 %v653_v43  ;;  %v659_v63 = vpack.c.bf16 %v78_v57, %v77_v55  ;;  %v47_v1 = vld [vmem:[#allocation2 + $0x50] sm:$0xff]  ;;  %v48_v2 = vld [vmem:[#allocation2 + $0x58] sm:$0xff]  ;;  %v661_v4 = vpack.c.bf16 %v96_v61, %v95_v60  ;;  %v65_v6 = vld [vmem:[#allocation2 + $0xe0] sm:$0xff] }
  0x23   :  { %624 = vmatpush3.bf16.msra.mxu0 %v623_v48  ;;  %v79_v3 = vld [vmem:[#allocation2 + $0x150] sm:$0xff]  ;;  %v80_v5 = vld [vmem:[#allocation2 + $0x158] sm:$0xff]  ;;  %v66_v7 = vld [vmem:[#allocation2 + $0xe8] sm:$0xff]  ;;  %v631_v10 = vpack.c.bf16 %v48_v2, %v47_v1 }
  0x24   :  { %626 = vmatprep.subr.bf16.mxu0 %v625_v52  ;;  %v97_v8 = vld [vmem:[#allocation2 + $0x1e0] sm:$0xff]  ;;  %v98_v9 = vld [vmem:[#allocation2 + $0x1e8] sm:$0xff]  ;;  %v663_v13 = vpack.c.bf16 %v80_v5, %v79_v3  ;;  %v633_v14 = vpack.c.bf16 %v66_v7, %v65_v6  ;;  %v67_v19 = vld [vmem:[#allocation2 + $0xf0] sm:$0xff] }
  0x25   :  { %656 = vmatpush3.bf16.msra.mxu1 %v655_v51  ;;  %v49_v11 = vld [vmem:[#allocation2 + $0x60] sm:$0xff]  ;;  %v50_v12 = vld [vmem:[#allocation2 + $0x68] sm:$0xff]  ;;  %v665_v18 = vpack.c.bf16 %v98_v9, %v97_v8  ;;  %v68_v20 = vld [vmem:[#allocation2 + $0xf8] sm:$0xff] }
  0x26   :  { %658 = vmatprep.subr.bf16.mxu1 %v657_v56  ;;  %v81_v15 = vld [vmem:[#allocation2 + $0x160] sm:$0xff]  ;;  %v82_v16 = vld [vmem:[#allocation2 + $0x168] sm:$0xff]  ;;  %v32_v21 = vld [vmem:[%s864_s0 + $0x18] sm:$0xff]  ;;  %v635_v24 = vpack.c.bf16 %v50_v12, %v49_v11  ;;  %v637_v26 = vpack.c.bf16 %v68_v20, %v67_v19 }
  0x27   :  { %628 = vmatpush3.bf16.msra.mxu0 %v627_v62  ;;  %v30_v17 = vld [vmem:[%s864_s0 + $0x8] sm:$0xff]  ;;  %v99_v22 = vld [vmem:[#allocation2 + $0x1f0] sm:$0xff]  ;;  %v100_v23 = vld [vmem:[#allocation2 + $0x1f8] sm:$0xff]  ;;  %306 = vmatprep.mubr.f32.mxu1 %v32_v21  ;;  %v667_v25 = vpack.c.bf16 %v82_v16, %v81_v15 }
  0x28   :  { %630 = vmatprep.subr.bf16.mxu0 %v629_v0  ;;  %236 = vmatprep.mubr.f32.mxu0 %v30_v17  ;;  %v51_v27 = vld [vmem:[#allocation2 + $0x70] sm:$0xff]  ;;  %v52_v28 = vld [vmem:[#allocation2 + $0x78] sm:$0xff]  ;;  %v669_v30 = vpack.c.bf16 %v100_v23, %v99_v22  ;;  %v117_v32 = vld [vmem:[#allocation2 + $0x280] sm:$0xff] }
  0x29   :  { %660 = vmatpush3.bf16.msra.mxu1 %v659_v63  ;;  %v83_v29 = vld [vmem:[#allocation2 + $0x170] sm:$0xff]  ;;  %v84_v31 = vld [vmem:[#allocation2 + $0x178] sm:$0xff]  ;;  %v118_v33 = vld [vmem:[#allocation2 + $0x288] sm:$0xff]  ;;  %v639_v36 = vpack.c.bf16 %v52_v28, %v51_v27 }
  0x2a   :  { %662 = vmatprep.subr.bf16.mxu1 %v661_v4  ;;  %v149_v34 = vld [vmem:[#allocation2 + $0x380] sm:$0xff]  ;;  %v150_v35 = vld [vmem:[#allocation2 + $0x388] sm:$0xff]  ;;  %v671_v37 = vpack.c.bf16 %v84_v31, %v83_v29  ;;  %v673_v38 = vpack.c.bf16 %v118_v33, %v117_v32  ;;  %v119_v44 = vld [vmem:[#allocation2 + $0x290] sm:$0xff] }
  0x2b   :  { %632 = vmatpush3.bf16.msra.mxu0 %v631_v10  ;;  %v101_v39 = vld [vmem:[#allocation2 + $0x200] sm:$0xff]  ;;  %v102_v40 = vld [vmem:[#allocation2 + $0x208] sm:$0xff]  ;;  %v705_v42 = vpack.c.bf16 %v150_v35, %v149_v34  ;;  %v120_v45 = vld [vmem:[#allocation2 + $0x298] sm:$0xff] }
  0x2c   :  { %634 = vmatprep.subr.bf16.mxu0 %v633_v14  ;;  %v133_v41 = vld [vmem:[#allocation2 + $0x300] sm:$0xff]  ;;  %v134_v43 = vld [vmem:[#allocation2 + $0x308] sm:$0xff]  ;;  %v151_v46 = vld [vmem:[#allocation2 + $0x390] sm:$0xff]  ;;  %v675_v49 = vpack.c.bf16 %v102_v40, %v101_v39  ;;  %v677_v52 = vpack.c.bf16 %v120_v45, %v119_v44 }
  0x2d   :  { %664 = vmatpush3.bf16.msra.mxu1 %v663_v13  ;;  %v152_v47 = vld [vmem:[#allocation2 + $0x398] sm:$0xff]  ;;  %v29_v48 = vld [vmem:[%s864_s0] sm:$0xff]  ;;  %v31_v50 = vld [vmem:[%s864_s0 + $0x10] sm:$0xff]  ;;  %v707_v51 = vpack.c.bf16 %v134_v43, %v133_v41 }
  0x2e   :  { %666 = vmatprep.subr.bf16.mxu1 %v665_v18  ;;  %v103_v53 = vld [vmem:[#allocation2 + $0x210] sm:$0xff]  ;;  %v104_v54 = vld [vmem:[#allocation2 + $0x218] sm:$0xff]  ;;  %v709_v56 = vpack.c.bf16 %v152_v47, %v151_v46  ;;  %v121_v58 = vld [vmem:[#allocation2 + $0x2a0] sm:$0xff] }
  0x2f   :  { %636 = vmatpush3.bf16.msra.mxu0 %v635_v24  ;;  %v135_v55 = vld [vmem:[#allocation2 + $0x310] sm:$0xff]  ;;  %v136_v57 = vld [vmem:[#allocation2 + $0x318] sm:$0xff]  ;;  %v122_v59 = vld [vmem:[#allocation2 + $0x2a8] sm:$0xff]  ;;  %v679_v62 = vpack.c.bf16 %v104_v54, %v103_v53 }
  0x30   :  { %638 = vmatprep.subr.bf16.mxu0 %v637_v26  ;;  %v153_v60 = vld [vmem:[#allocation2 + $0x3a0] sm:$0xff]  ;;  %v154_v61 = vld [vmem:[#allocation2 + $0x3a8] sm:$0xff]  ;;  %v711_v63 = vpack.c.bf16 %v136_v57, %v135_v55  ;;  %v681_v0 = vpack.c.bf16 %v122_v59, %v121_v58  ;;  %v123_v6 = vld [vmem:[#allocation2 + $0x2b0] sm:$0xff] }
  0x31   :  { %668 = vmatpush3.bf16.msra.mxu1 %v667_v25  ;;  %v105_v1 = vld [vmem:[#allocation2 + $0x220] sm:$0xff]  ;;  %v106_v2 = vld [vmem:[#allocation2 + $0x228] sm:$0xff]  ;;  %v713_v4 = vpack.c.bf16 %v154_v61, %v153_v60  ;;  %v124_v7 = vld [vmem:[#allocation2 + $0x2b8] sm:$0xff] }
  0x32   :  { %670 = vmatprep.subr.bf16.mxu1 %v669_v30  ;;  %v137_v3 = vld [vmem:[#allocation2 + $0x320] sm:$0xff]  ;;  %v138_v5 = vld [vmem:[#allocation2 + $0x328] sm:$0xff]  ;;  %v155_v8 = vld [vmem:[#allocation2 + $0x3b0] sm:$0xff]  ;;  %v683_v10 = vpack.c.bf16 %v106_v2, %v105_v1  ;;  %v685_v12 = vpack.c.bf16 %v124_v7, %v123_v6 }
  0x33   :  { %640 = vmatpush3.bf16.msra.mxu0 %v639_v36  ;;  %v156_v9 = vld [vmem:[#allocation2 + $0x3b8] sm:$0xff]  ;;  %v715_v11 = vpack.c.bf16 %v138_v5, %v137_v3  ;;  %v107_v13 = vld [vmem:[#allocation2 + $0x230] sm:$0xff]  ;;  %v125_v18 = vld [vmem:[#allocation2 + $0x2c0] sm:$0xff] }
  0x34   :  { %674 = vmatprep.subr.bf16.mxu0 %v673_v38  ;;  %v108_v14 = vld [vmem:[#allocation2 + $0x238] sm:$0xff]  ;;  %v139_v15 = vld [vmem:[#allocation2 + $0x330] sm:$0xff]  ;;  %v717_v16 = vpack.c.bf16 %v156_v9, %v155_v8  ;;  %v126_v19 = vld [vmem:[#allocation2 + $0x2c8] sm:$0xff] }
  0x35   :  { %672 = vmatpush3.bf16.msra.mxu1 %v671_v37  ;;  %v140_v17 = vld [vmem:[#allocation2 + $0x338] sm:$0xff]  ;;  %v157_v20 = vld [vmem:[#allocation2 + $0x3c0] sm:$0xff]  ;;  %v158_v21 = vld [vmem:[#allocation2 + $0x3c8] sm:$0xff]  ;;  %v687_v22 = vpack.c.bf16 %v108_v14, %v107_v13  ;;  %v689_v26 = vpack.c.bf16 %v126_v19, %v125_v18 }
  0x36   :  { %706 = vmatprep.subr.bf16.mxu1 %v705_v42  ;;  %237 = vmatmul.mubr.f32.vlgmr.msra.gmra.mrb[0].mxu0 %v29_v48  ;;  %v34_v23 = vld [vmem:[%s864_s0 + $0x28] sm:$0xff]  ;;  %v36_v24 = vld [vmem:[%s864_s0 + $0x38] sm:$0xff]  ;;  %v719_v25 = vpack.c.bf16 %v140_v17, %v139_v15  ;;  %v109_v27 = vld [vmem:[#allocation2 + $0x240] sm:$0xff]  ;;  %v721_v30 = vpack.c.bf16 %v158_v21, %v157_v20 }
  0x37   :  { %676 = vmatpush3.bf16.msra.mxu0 %v675_v49  ;;  %v110_v28 = vld [vmem:[#allocation2 + $0x248] sm:$0xff]  ;;  %v141_v29 = vld [vmem:[#allocation2 + $0x340] sm:$0xff]  ;;  %v127_v32 = vld [vmem:[#allocation2 + $0x2d0] sm:$0xff]  ;;  %376 = vmatprep.mubr.f32.mxu0 %v34_v23 }
  0x38   :  { %307 = vmatmul.mubr.f32.vlgmr.msra.gmra.mrb[0].mxu1 %v31_v50  ;;  %678 = vmatprep.subr.bf16.mxu0 %v677_v52  ;;  %v142_v31 = vld [vmem:[#allocation2 + $0x348] sm:$0xff]  ;;  %v128_v33 = vld [vmem:[#allocation2 + $0x2d8] sm:$0xff]  ;;  %v159_v34 = vld [vmem:[#allocation2 + $0x3d0] sm:$0xff]  ;;  %v691_v36 = vpack.c.bf16 %v110_v28, %v109_v27 }
  0x39   :  { %708 = vmatpush3.bf16.msra.mxu1 %v707_v51  ;;  %v160_v35 = vld [vmem:[#allocation2 + $0x3d8] sm:$0xff]  ;;  %446 = vmatprep.mubr.f32.mxu1 %v36_v24  ;;  %v723_v37 = vpack.c.bf16 %v142_v31, %v141_v29  ;;  %v693_v38 = vpack.c.bf16 %v128_v33, %v127_v32  ;;  %v111_v39 = vld [vmem:[#allocation2 + $0x250] sm:$0xff]  ;;  %v129_v44 = vld [vmem:[#allocation2 + $0x2e0] sm:$0xff] }
  0x3a   :  { %710 = vmatprep.subr.bf16.mxu1 %v709_v56  ;;  %v112_v40 = vld [vmem:[#allocation2 + $0x258] sm:$0xff]  ;;  %v143_v41 = vld [vmem:[#allocation2 + $0x350] sm:$0xff]  ;;  %v725_v42 = vpack.c.bf16 %v160_v35, %v159_v34  ;;  %v130_v45 = vld [vmem:[#allocation2 + $0x2e8] sm:$0xff] }
  0x3b   :  { %680 = vmatpush3.bf16.msra.mxu0 %v679_v62  ;;  %v144_v43 = vld [vmem:[#allocation2 + $0x358] sm:$0xff]  ;;  %v161_v46 = vld [vmem:[#allocation2 + $0x3e0] sm:$0xff]  ;;  %v162_v47 = vld [vmem:[#allocation2 + $0x3e8] sm:$0xff]  ;;  %v695_v48 = vpack.c.bf16 %v112_v40, %v111_v39  ;;  %v697_v50 = vpack.c.bf16 %v130_v45, %v129_v44 }
  0x3c   :  { %682 = vmatprep.subr.bf16.mxu0 %v681_v0  ;;  %v727_v49 = vpack.c.bf16 %v144_v43, %v143_v41  ;;  %v113_v51 = vld [vmem:[#allocation2 + $0x260] sm:$0xff]  ;;  %v114_v52 = vld [vmem:[#allocation2 + $0x268] sm:$0xff]  ;;  %v729_v54 = vpack.c.bf16 %v162_v47, %v161_v46  ;;  %v131_v56 = vld [vmem:[#allocation2 + $0x2f0] sm:$0xff] }
  0x3d   :  { %712 = vmatpush3.bf16.msra.mxu1 %v711_v63  ;;  %v145_v53 = vld [vmem:[#allocation2 + $0x360] sm:$0xff]  ;;  %v146_v55 = vld [vmem:[#allocation2 + $0x368] sm:$0xff]  ;;  %v132_v57 = vld [vmem:[#allocation2 + $0x2f8] sm:$0xff]  ;;  %v699_v60 = vpack.c.bf16 %v114_v52, %v113_v51 }
  0x3e   :  { %714 = vmatprep.subr.bf16.mxu1 %v713_v4  ;;  %v163_v58 = vld [vmem:[#allocation2 + $0x3f0] sm:$0xff]  ;;  %v164_v59 = vld [vmem:[#allocation2 + $0x3f8] sm:$0xff]  ;;  %v731_v61 = vpack.c.bf16 %v146_v55, %v145_v53  ;;  %v701_v62 = vpack.c.bf16 %v132_v57, %v131_v56  ;;  %v33_v6 = vld [vmem:[%s864_s0 + $0x20] sm:$0xff] }
  0x3f   :  { %684 = vmatpush3.bf16.msra.mxu0 %v683_v10  ;;  %v115_v63 = vld [vmem:[#allocation2 + $0x270] sm:$0xff]  ;;  %v116_v0 = vld [vmem:[#allocation2 + $0x278] sm:$0xff]  ;;  %v733_v1 = vpack.c.bf16 %v164_v59, %v163_v58  ;;  %v468_v9 = vld [vmem:[%s866_s2] ss:$0 sm:$0xff] }
  0x40   :  { %686 = vmatprep.subr.bf16.mxu0 %v685_v12  ;;  %v147_v2 = vld [vmem:[#allocation2 + $0x370] sm:$0xff]  ;;  %v148_v3 = vld [vmem:[#allocation2 + $0x378] sm:$0xff]  ;;  %v703_v4 = vpack.c.bf16 %v116_v0, %v115_v63 }
  0x41   :  { %716 = vmatpush3.bf16.msra.mxu1 %v715_v11  ;;  %v735_v5 = vpack.c.bf16 %v148_v3, %v147_v2  ;;  %v35_v7 = vld [vmem:[%s864_s0 + $0x30] sm:$0xff]  ;;  %s792_s0 = smov [#allocation5]  }
  0x42   :  { %718 = vmatprep.subr.bf16.mxu1 %v717_v16  ;;  %s459_s16 = sshll.u32 %s792_s0, 4  ;;  %s460_s16 = int_to_ptr.vmem [resolvable:$true] %s459_s16 }
  0x43   :  { %688 = vmatpush3.bf16.msra.mxu0 %v687_v22  ;;  %s763_s2 = scalar_lea.vmem %s460_s16, 128  ;;  %p768_p9 = scmp.lt.s32.totalorder %s460_s16, %s460_s16 }
  0x44   :  { %690 = vmatprep.subr.bf16.mxu0 %v689_v26  ;;  %p764_p8 = scmp.ne.s32.totalorder %s460_s16, %s763_s2  ;;  %p769_p10 = scmp.lt.s32.totalorder %s763_s2, %s763_s2 }
  0x45   :  { %720 = vmatpush3.bf16.msra.mxu1 %v719_v25 }
  0x46   :  { %722 = vmatprep.subr.bf16.mxu1 %v721_v30  ;;  %p770_p11 = por %p769_p10, %p768_p9 }
  0x47   :  { %692 = vmatpush3.bf16.msra.mxu0 %v691_v36 }
  0x48   :  { %694 = vmatprep.subr.bf16.mxu0 %v693_v38  ;;  %p771_p12 = pnand %p770_p11, %p764_p8 }
  0x49   :  { %724 = vmatpush3.bf16.msra.mxu1 %v723_v37 }
  0x4a   :  { %726 = vmatprep.subr.bf16.mxu1 %v725_v42 }
  0x4b   :  { %696 = vmatpush3.bf16.msra.mxu0 %v695_v48 }
  0x4c   :  { %698 = vmatprep.subr.bf16.mxu0 %v697_v50 }
  0x4d   :  { %728 = vmatpush3.bf16.msra.mxu1 %v727_v49 }
  0x4e   :  { %730 = vmatprep.subr.bf16.mxu1 %v729_v54 }
  0x4f   :  { %700 = vmatpush3.bf16.msra.mxu0 %v699_v60 }
  0x50   :  { %702 = vmatprep.subr.bf16.mxu0 %v701_v62 }
  0x51   :  { %732 = vmatpush3.bf16.msra.mxu1 %v731_v61 }
  0x52   :  { %734 = vmatprep.subr.bf16.mxu1 %v733_v1 }
  0x53   :  { %704 = vmatpush3.bf16.msra.mxu0 %v703_v4 }
  0x55   :  { %736 = vmatpush3.bf16.msra.mxu1 %v735_v5 }
  0x56   :  { %377 = vmatmul.mubr.f32.vlgmr.msra.gmra.mrb[2].mxu0 %v33_v6 }
  0x58   :  { %447 = vmatmul.mubr.f32.vlgmr.msra.gmra.mrb[2].mxu1 %v35_v7 }
 0x109   :  { %v501_v8 = vpop.f32.mrb[0].mxu0 }
 0x10a   :  { %v502_v10 = vpop.f32.mrb[1].mxu0 }
 0x10b   :  { %v536_v11 = vpop.f32.mrb[0].mxu1  ;;  %v503_v12 = vadd.f32 %v502_v10, %v501_v8 }
 0x10c   :  { %v537_v13 = vpop.f32.mrb[1].mxu1 }
 0x10d   :  { %v538_v14 = vadd.f32 %v537_v13, %v536_v11  ;;  %v239_v15 = vadd.f32 %v503_v12, %v468_v9 }
 0x10f   :  { %v309_v16 = vadd.f32 %v538_v14, %v239_v15 }
 0x129   :  { %v571_v17 = vpop.f32.mrb[2].mxu0 }
 0x12a   :  { %v572_v18 = vpop.f32.mrb[3].mxu0 }
 0x12b   :  { %v606_v19 = vpop.f32.mrb[2].mxu1  ;;  %v573_v20 = vadd.f32 %v572_v18, %v571_v17 }
 0x12c   :  { %v607_v21 = vpop.f32.mrb[3].mxu1 }
 0x12d   :  { %v608_v22 = vadd.f32 %v607_v21, %v606_v19  ;;  %v379_v23 = vadd.f32 %v573_v20, %v309_v16 }
 0x12f   :  { %v449_v24 = vadd.f32 %v608_v22, %v379_v23 }
 0x131   :  { %452 = vst [vmem:[#allocation5] sm:$0xff] %v449_v24 }
 0x132   :  { %774 = shalt.err (!%p771_p12)
}
 0x133   :  { %s775_s19 = scalar_lea.hbm %s867_s3, 128 }
 0x134   :  { %p776_p13 = scmp.ne.s32.totalorder %s867_s3, %s775_s19  ;;  %p779_p0 = scmp.lt.u32.totalorder %s775_s19, %s867_s3 }
 0x136   :  { %p781_p1 = pnand %p779_p0, %p776_p13 }
 0x138   :  { %784 = shalt.err (!%p781_p1)
}
 0x139   :  { %462 = dma.vmem_to_hbm [thread:$0]  %s460_s16, 128, %s867_s3, [#allocation4]  }
 0x13a   :  { %787 = dma.done.wait [#allocation4], 128  }
 0x13b   :  { %788 = vsyncadd [#allocation4], 4294967168 }
 0x13c   :  { %466 = vsyncpa [#allocation3], 1 }
 0x13d   :  { %467 = vsyncpa [#allocation4], 1 }

</bundles_post_ra>
